<compile_context>
chip_gen: v7x
topology: tpu7x:2x2x1
jax: 0.10.0
libtpu: 0.0.40
codegen_flags: <defaults>
</compile_context>

<pallas_src>
import numpy as np
import jax
import jax.numpy as jnp
from jax.experimental import pallas as pl
from jax.experimental.pallas import tpu as pltpu

RESOLUTION = 0.5


def round_to_resolution(value, resolution):
    # float floor-division, like the PyTorch helper (value // resolution * resolution)
    return np.floor(value / resolution) * resolution


# --------------------------- synthetic "Material" ----------------------------
NUM_TRANSITIONS = 3
ENERGY_VACANCIES = np.array([0.0, 1.0, 2.5])
OSCILLATOR_STRENGTHS = np.array([1.0, 0.7, 0.4], dtype=np.float64)
LOR_CENTERS = np.array([102.0, 105.0, 108.0])
LOR_GAMMA = 1.5


def lor_factor(energies, i):
    hw = LOR_GAMMA / 2.0
    return (1.0 / np.pi) * hw / ((energies - LOR_CENTERS[i]) ** 2 + hw ** 2)


# --------------------- synthetic "ThermodynamicalProperties" -----------------
KT, MU = 0.25, 0.0


def thermal_factor(energies):
    return 1.0 / (np.exp((energies - MU) / KT) + 1.0)


# -------------------------------- dos function -------------------------------
def dos_function_np(e):
    # deterministic smooth DOS (numpy, evaluated once at init)
    return np.exp(-0.5 * (e / 1.2) ** 2) + 0.1


# ---------------------- align_energies (init-time glue) ----------------------
RAW_DOS_ENERGIES = np.arange(-2.3, 2.31, 0.1)
RAW_XFEL_ENERGIES = np.arange(100.0, 107.51, 0.5)
RIXS_ENERGIES = np.arange(99.0, 110.5, 1.0)

sym_dos = round_to_resolution(np.abs(RAW_DOS_ENERGIES).max(), RESOLUTION)
DOS_ENERGIES = np.arange(-sym_dos, sym_dos + RESOLUTION, RESOLUTION)
new_min_x = round_to_resolution(RAW_XFEL_ENERGIES.min(), RESOLUTION)
new_max_x = round_to_resolution(RAW_XFEL_ENERGIES.max(), RESOLUTION)
XFEL_ENERGIES = np.arange(new_min_x, new_max_x + RESOLUTION, RESOLUTION)
min_vac = round_to_resolution(ENERGY_VACANCIES.min(), RESOLUTION)
max_vac = round_to_resolution(ENERGY_VACANCIES.max(), RESOLUTION)
difference = (XFEL_ENERGIES[-1] + sym_dos + max_vac
              - (XFEL_ENERGIES[0] - sym_dos + min_vac)) // RESOLUTION
addition = RESOLUTION if not difference % 2 else 0.0
FULL_ENERGIES = np.arange(XFEL_ENERGIES[0] - sym_dos + min_vac,
                          XFEL_ENERGIES[-1] + sym_dos + max_vac + addition,
                          RESOLUTION)

OUTPUT_MAP = np.zeros((RIXS_ENERGIES.shape[0], FULL_ENERGIES.shape[0]),
                      dtype=np.float64)
for i, e in enumerate(RIXS_ENERGIES):
    OUTPUT_MAP[i, int(np.abs(FULL_ENERGIES - e).argmin())] = 1.0
assert OUTPUT_MAP.sum() == RIXS_ENERGIES.shape[0]

DELTAS = ((ENERGY_VACANCIES - ENERGY_VACANCIES.min()) // RESOLUTION).astype(int)
MAX_DELTA = int(DELTAS.max())

E_DOS = DOS_ENERGIES.shape[0]        # 9
E_XFEL = XFEL_ENERGIES.shape[0]      # 16
E_FULL = FULL_ENERGIES.shape[0]      # 29
R_OUT = RIXS_ENERGIES.shape[0]       # 12
L_CONV = E_XFEL + E_DOS - 1          # 24 == E_FULL - MAX_DELTA
assert L_CONV == E_FULL - MAX_DELTA, (L_CONV, E_FULL, MAX_DELTA)

THERMAL_FACTORS = thermal_factor(DOS_ENERGIES)
LORENTZIANS = np.stack([lor_factor(FULL_ENERGIES, i)
                        for i in range(NUM_TRANSITIONS)])
SCALE = RESOLUTION / 0.5


# ------------- fold the whole input-independent pipeline into W --------------
def _build_weight():
    """W[m, r] so that out[b, r] = sum_m x[b, m] * W[m, r] reproduces
    conv1d -> shift-align -> Lorentzian sum -> output_map -> rescale."""
    dos = dos_function_np(DOS_ENERGIES)
    # cross_sections[t, k] = osc[t] * dos[k] * thermal[k]
    cs = OSCILLATOR_STRENGTHS[:, None] * (dos * THERMAL_FACTORS)[None, :]
    w = np.zeros((E_XFEL, R_OUT), np.float64)
    for t in range(NUM_TRANSITIONS):
        d = int(DELTAS[t])
        for k in range(E_DOS):
            for j in range(L_CONV):
                m = j + k - (E_DOS - 1)          # conv padding folded in here
                if 0 <= m < E_XFEL:
                    w[m, :] += cs[t, k] * LORENTZIANS[t, d + j] * OUTPUT_MAP[:, d + j]
    return (w * SCALE).astype(np.float32)


W_CONST = _build_weight()                        # (E_XFEL, R_OUT) = (16, 12)

# Block-diagonal, lane-packed copies of W, built once per packing factor.
_W_PACKED_CACHE = {}


def _packed_weight(g):
    if g not in _W_PACKED_CACHE:
        wp = np.kron(np.eye(g, dtype=np.float32), W_CONST).astype(np.float32)
        _W_PACKED_CACHE[g] = jnp.asarray(wp)     # (16*g, 12*g)
    return _W_PACKED_CACHE[g]


# --------------------------------- kernel ------------------------------------
def _rixs_kernel(x_ref, w_ref, o_ref):
    # Single MXU matmul: (tb, 16G) @ (16G, 12G) -> (tb, 12G), lane-dense I/O.
    o_ref[...] = jnp.dot(x_ref[...], w_ref[...],
                         preferred_element_type=jnp.float32)


# ------------------------------ tiling helpers --------------------------------
def _round_up(v, m):
    return ((v + m - 1) // m) * m


def _pick_packing_factor():
    # G=8 -> K=128 / N=96 matches v5e's 128-wide MXU (single K pass);
    # G=16 -> K=256 / N=192 maps onto the 256x256 MXU of v6e / v7x.
    try:
        kind = jax.devices()[0].device_kind.lower()
    except Exception:
        return 16
    return 8 if "v5" in kind else 16


def _choose_packed_tile(packed_rows, max_tile=8192):
    """Packed-row tile: multiple of 8 (sublane), capped by max_tile, and kept
    at <= ceil(rows/2) so there are >= 2 grid steps once there is real work
    (v7x megacore sharding)."""
    max_tile = max(8, (max_tile // 8) * 8)
    half = _round_up(pl.cdiv(packed_rows, 2), 8)
    return max(8, min(max_tile, half))


# --------------------------------- wrapper ------------------------------------
def rixs_forward(xfel_pulses, *, max_packed_tile=8192, packing=None):
    assert xfel_pulses.ndim == 2 and xfel_pulses.shape[1] == E_XFEL
    batch = xfel_pulses.shape[0]
    x = xfel_pulses.astype(jnp.float32)

    g = _pick_packing_factor() if packing is None else int(packing)

    # Pad only up to the packing factor (<= G-1 rows).  For tiny batches, pad
    # once more to a single (8, .) sublane tile; never pad to the tile size.
    b_g = pl.cdiv(batch, g) * g
    if b_g < 8 * g:
        b_g = 8 * g
    if b_g != batch:
        x = jnp.pad(x, ((0, b_g - batch), (0, 0)))

    bp = b_g // g                       # packed rows
    kd = E_XFEL * g                     # lane-dense K (128 or 256)
    nd = R_OUT * g                      # lane-dense N (96 or 192)
    xp = x.reshape(bp, kd)              # free row-major view

    tb = _choose_packed_tile(bp, max_packed_tile)
    grid = (pl.cdiv(bp, tb),)           # ragged last block handled by Pallas

    w = _packed_weight(g)               # constant block-diagonal weight

    # VMEM budget: double-buffered in + out blocks + W + headroom, capped for
    # v7x's 64 MiB physical VMEM.
    block_bytes = tb * (kd + nd) * 4
    vmem_limit = int(min(max(2 * block_bytes + kd * nd * 4 + (4 << 20),
                             16 << 20),
                         48 << 20))

    out = pl.pallas_call(
        _rixs_kernel,
        out_shape=jax.ShapeDtypeStruct((bp, nd), jnp.float32),
        grid_spec=pltpu.PrefetchScalarGridSpec(
            num_scalar_prefetch=0,
            grid=grid,
            in_specs=[
                pl.BlockSpec((tb, kd), lambda i: (i, 0)),   # packed pulse tile
                pl.BlockSpec((kd, nd), lambda i: (0, 0)),   # constant W (resident)
            ],
            out_specs=pl.BlockSpec((tb, nd), lambda i: (i, 0)),
        ),
        compiler_params=pltpu.CompilerParams(
            dimension_semantics=("parallel",),              # megacore-shard batch
            vmem_limit_bytes=vmem_limit,
        ),
        cost_estimate=pl.CostEstimate(
            flops=2 * bp * kd * nd,
            transcendentals=0,
            bytes_accessed=(bp * kd + bp * nd + kd * nd) * 4,
        ),
    )(xp, w)

    out = out.reshape(b_g, R_OUT)       # free view back to (rows, 12)
    return out[:batch] if b_g != batch else out


# --------------------------- plain-numpy reference ---------------------------
# Step-by-step pipeline (cross-section -> grouped padded conv -> shift-align ->
# Lorentzian sum -> output_map projection), independent of the folded W above.
def rixs_forward_ref(xfel_pulses_np):
    dos = dos_function_np(DOS_ENERGIES)
    cs = OSCILLATOR_STRENGTHS[:, None] * (dos * THERMAL_FACTORS)[None, :]
    x = np.asarray(xfel_pulses_np, np.float64)
    b = x.shape[0]
    xpad = np.pad(x, ((0, 0), (E_DOS - 1, E_DOS - 1)))
    conv = np.zeros((b, NUM_TRANSITIONS, L_CONV))
    for t in range(NUM_TRANSITIONS):
        for k in range(E_DOS):
            conv[:, t, :] += cs[t, k] * xpad[:, k:k + L_CONV]
    aligned = np.zeros((b, NUM_TRANSITIONS, E_FULL))
    for t in range(NUM_TRANSITIONS):
        d = int(DELTAS[t])
        aligned[:, t, d:d + L_CONV] = conv[:, t, :]
    hrs = (aligned * LORENTZIANS[None]).sum(axis=1)
    return (OUTPUT_MAP @ hrs.T).T * SCALE


if __name__ == "__main__":
    key = jax.random.PRNGKey(0)
    k_small, k_big = jax.random.split(key)

    # small sanity shape (single block, padded-to-sublane path)
    B = 2
    x_small = jax.random.uniform(k_small, (B, E_XFEL), dtype=jnp.float32)
    out_small = jax.block_until_ready(rixs_forward(x_small))
    ref_small = rixs_forward_ref(np.asarray(x_small))
    # Tolerance accounts for the MXU's f32 matmul pass decomposition.
    np.testing.assert_allclose(np.asarray(out_small), ref_small,
                               rtol=5e-3, atol=1e-5)

    # exercise the multi-tile grid, ragged last block, pad-to-G bookkeeping and
    # megacore-parallel batch axis (B not a multiple of 8 or of the packing factor)
    B2 = 1003
    x_big = jax.random.uniform(k_big, (B2, E_XFEL), dtype=jnp.float32)
    out_big = jax.block_until_ready(rixs_forward(x_big, max_packed_tile=16))
    ref_big = rixs_forward_ref(np.asarray(x_big))
    np.testing.assert_allclose(np.asarray(out_big), ref_big,
                               rtol=5e-3, atol=1e-5)

    print("KERNEL_OK")
</pallas_src>

<mosaic_0001>
module attributes {stable_mosaic.version = 11 : i64} {
  func.func @_rixs_kernel(%arg0: i32, %arg1: memref<8x256xf32, #tpu.memory_space<vmem>>, %arg2: memref<256x192xf32, #tpu.memory_space<vmem>>, %arg3: memref<8x192xf32, #tpu.memory_space<vmem>>) attributes {dimension_semantics = [#tpu.dimension_semantics<parallel>], iteration_bounds = array<i64: 1>, scalar_prefetch = 0 : i64, scratch_operands = 0 : i64, tpu.core_type = #tpu.core_type<tc>, window_params = [{transform_indices = @transform_0, window_bounds = array<i64: 8, 256>}, {pipeline_mode = #tpu.pipeline_mode<synchronous>, transform_indices = @transform_1, window_bounds = array<i64: 256, 192>}, {transform_indices = @transform_2, window_bounds = array<i64: 8, 192>}]} {
    %c0 = arith.constant 0 : index
    %c0_0 = arith.constant 0 : index
    %0 = vector.load %arg1[%c0, %c0_0] : memref<8x256xf32, #tpu.memory_space<vmem>>, vector<8x256xf32>
    %c0_1 = arith.constant 0 : index
    %c0_2 = arith.constant 0 : index
    %1 = vector.load %arg2[%c0_1, %c0_2] : memref<256x192xf32, #tpu.memory_space<vmem>>, vector<256x192xf32>
    %cst = arith.constant dense<0.000000e+00> : vector<8x192xf32>
    %2 = tpu.matmul %0, %1, %cst {dimension_numbers = #tpu.dot_dimension_numbers<[1], [0], [0], [1], [0, 0, 1, 1], [], []>} : vector<8x256xf32>, vector<256x192xf32>, vector<8x192xf32> -> vector<8x192xf32>
    %c0_3 = arith.constant 0 : index
    %c0_4 = arith.constant 0 : index
    %3 = vector.load %arg3[%c0_3, %c0_4] : memref<8x192xf32, #tpu.memory_space<vmem>>, vector<8x192xf32>
    tpu.vector_store %arg3[%c0_3, %c0_4], %2 {strides = array<i32>} : memref<8x192xf32, #tpu.memory_space<vmem>>, vector<8x192xf32>,
    return
  }
  func.func @transform_0(%arg0: i32) -> (i32, i32) {
    %c0_i32 = arith.constant 0 : i32
    %c0_i32_0 = arith.constant 0 : i32
    return %arg0, %c0_i32 : i32, i32
  }
  func.func @transform_1(%arg0: i32) -> (i32, i32) {
    %c0_i32 = arith.constant 0 : i32
    %c0_i32_0 = arith.constant 0 : i32
    %c0_i32_1 = arith.constant 0 : i32
    return %c0_i32, %c0_i32_0 : i32, i32
  }
  func.func @transform_2(%arg0: i32) -> (i32, i32) {
    %c0_i32 = arith.constant 0 : i32
    %c0_i32_0 = arith.constant 0 : i32
    return %arg0, %c0_i32 : i32, i32
  }
}

</mosaic_0001>

<bundles_post_ra>
// kernel: tpu_custom_call.1
= control target key start
LH: loop header
LB: loop body
LE: loop exit
PB: predicated region body
PF: predicated region fallthrough
CT: control target
= control target key end

     0   :  { %s481_s0 = inlined_call_operand.vmem [shape: f32[8,256], index: 0, kind: input, shape index: {}]   ;;  %s482_s1 = inlined_call_operand.vmem [shape: f32[256,192], index: 1, kind: input, shape index: {}]   ;;  %s483_s2 = inlined_call_operand.hbm [shape: f32[8,192], index: 2, kind: output, shape index: {}]  }
   0x1   :  { %v15_v0 = vld [vmem:[%s482_s1 + $0x8] sm:$0xff]  ;;  %v17_v1 = vld [vmem:[%s482_s1 + $0x18] sm:$0xff]  ;;  %v14_v2 = vld [vmem:[%s482_s1] sm:$0xff] }
   0x2   :  { %v166_v3 = vpack.c.bf16 %v17_v1, %v15_v0  ;;  %v16_v4 = vld [vmem:[%s482_s1 + $0x10] sm:$0xff]  ;;  %v19_v5 = vld [vmem:[%s482_s1 + $0x28] sm:$0xff]  ;;  %v21_v6 = vld [vmem:[%s482_s1 + $0x38] sm:$0xff] }
   0x3   :  { %v168_v7 = vpack.c.bf16 %v16_v4, %v14_v2  ;;  %v170_v8 = vpack.c.bf16 %v21_v6, %v19_v5  ;;  %v18_v9 = vld [vmem:[%s482_s1 + $0x20] sm:$0xff]  ;;  %v20_v10 = vld [vmem:[%s482_s1 + $0x30] sm:$0xff]  ;;  %v23_v11 = vld [vmem:[%s482_s1 + $0x48] sm:$0xff] }
   0x4   :  { %167 = vmatprep.subr.bf16.mxu0 %v166_v3  ;;  %v25_v12 = vld [vmem:[%s482_s1 + $0x58] sm:$0xff]  ;;  %v172_v13 = vpack.c.bf16 %v20_v10, %v18_v9  ;;  %v22_v15 = vld [vmem:[%s482_s1 + $0x40] sm:$0xff]  ;;  %v24_v16 = vld [vmem:[%s482_s1 + $0x50] sm:$0xff] }
   0x5   :  { %169 = vmatpush1.bf16.msra.mxu0 %v168_v7  ;;  %v174_v14 = vpack.c.bf16 %v25_v12, %v23_v11  ;;  %v27_v17 = vld [vmem:[%s482_s1 + $0x68] sm:$0xff]  ;;  %v29_v18 = vld [vmem:[%s482_s1 + $0x78] sm:$0xff]  ;;  %v176_v19 = vpack.c.bf16 %v24_v16, %v22_v15  ;;  %v26_v21 = vld [vmem:[%s482_s1 + $0x60] sm:$0xff] }
   0x6   :  { %171 = vmatprep.subr.bf16.mxu0 %v170_v8  ;;  %v178_v20 = vpack.c.bf16 %v29_v18, %v27_v17  ;;  %v28_v22 = vld [vmem:[%s482_s1 + $0x70] sm:$0xff]  ;;  %v31_v23 = vld [vmem:[%s482_s1 + $0x88] sm:$0xff]  ;;  %v33_v24 = vld [vmem:[%s482_s1 + $0x98] sm:$0xff] }
   0x7   :  { %v180_v25 = vpack.c.bf16 %v28_v22, %v26_v21  ;;  %v182_v26 = vpack.c.bf16 %v33_v24, %v31_v23  ;;  %v30_v27 = vld [vmem:[%s482_s1 + $0x80] sm:$0xff]  ;;  %v32_v28 = vld [vmem:[%s482_s1 + $0x90] sm:$0xff]  ;;  %v35_v29 = vld [vmem:[%s482_s1 + $0xa8] sm:$0xff] }
   0x8   :  { %v37_v30 = vld [vmem:[%s482_s1 + $0xb8] sm:$0xff]  ;;  %v184_v31 = vpack.c.bf16 %v32_v28, %v30_v27  ;;  %v34_v33 = vld [vmem:[%s482_s1 + $0xa0] sm:$0xff]  ;;  %v36_v34 = vld [vmem:[%s482_s1 + $0xb0] sm:$0xff] }
   0x9   :  { %173 = vmatpush1.bf16.msra.mxu0 %v172_v13  ;;  %v186_v32 = vpack.c.bf16 %v37_v30, %v35_v29  ;;  %v39_v35 = vld [vmem:[%s482_s1 + $0xc8] sm:$0xff]  ;;  %v41_v36 = vld [vmem:[%s482_s1 + $0xd8] sm:$0xff]  ;;  %v188_v37 = vpack.c.bf16 %v36_v34, %v34_v33  ;;  %v38_v39 = vld [vmem:[%s482_s1 + $0xc0] sm:$0xff] }
   0xa   :  { %175 = vmatprep.subr.bf16.mxu0 %v174_v14  ;;  %v190_v38 = vpack.c.bf16 %v41_v36, %v39_v35  ;;  %v40_v40 = vld [vmem:[%s482_s1 + $0xd0] sm:$0xff]  ;;  %v13_v41 = vld [vmem:[%s481_s0 + $0x8] sm:$0xff]  ;;  %v45_v43 = vld [vmem:[%s482_s1 + $0xf8] sm:$0xff] }
   0xb   :  { %v43_v42 = vld [vmem:[%s482_s1 + $0xe8] sm:$0xff]  ;;  %142 = vmatprep.mubr.f32.mxu0 %v13_v41 }
   0xd   :  { %177 = vmatpush1.bf16.msra.mxu0 %v176_v19 }
   0xe   :  { %179 = vmatprep.subr.bf16.mxu0 %v178_v20 }
  0x11   :  { %181 = vmatpush1.bf16.msra.mxu0 %v180_v25 }
  0x12   :  { %183 = vmatprep.subr.bf16.mxu0 %v182_v26 }
  0x15   :  { %185 = vmatpush1.bf16.msra.mxu0 %v184_v31 }
  0x16   :  { %187 = vmatprep.subr.bf16.mxu0 %v186_v32 }
  0x17   :  { %7 = vsyncpa [#allocation3], 0  ;;  %v192_v44 = vpack.c.bf16 %v40_v40, %v38_v39  ;;  %v194_v45 = vpack.c.bf16 %v45_v43, %v43_v42  ;;  %v42_v46 = vld [vmem:[%s482_s1 + $0xe0] sm:$0xff]  ;;  %v44_v47 = vld [vmem:[%s482_s1 + $0xf0] sm:$0xff]  ;;  %s255_s29 = smov [#allocation2]   ;;  %vm150_vm0 = vcmask 523264  }
  0x18   :  { %v47_v48 = vld [vmem:[%s482_s1 + $0x108] sm:$0xff]  ;;  %v49_v49 = vld [vmem:[%s482_s1 + $0x118] sm:$0xff]  ;;  %v196_v50 = vpack.c.bf16 %v44_v47, %v42_v46  ;;  %v46_v52 = vld [vmem:[%s482_s1 + $0x100] sm:$0xff]  ;;  %s158_s30 = sshll.u32 %s255_s29, 4  ;;  %s159_s30 = int_to_ptr.vmem [resolvable:$true] %s158_s30 }
  0x19   :  { %189 = vmatpush1.bf16.msra.mxu0 %v188_v37  ;;  %v198_v51 = vpack.c.bf16 %v49_v49, %v47_v48  ;;  %v48_v53 = vld [vmem:[%s482_s1 + $0x110] sm:$0xff]  ;;  %v51_v54 = vld [vmem:[%s482_s1 + $0x128] sm:$0xff]  ;;  %v53_v55 = vld [vmem:[%s482_s1 + $0x138] sm:$0xff]  ;;  %s231_s3 = scalar_lea.vmem %s159_s30, 256  ;;  %p236_p1 = scmp.lt.s32.totalorder %s159_s30, %s159_s30 }
  0x1a   :  { %191 = vmatprep.subr.bf16.mxu0 %v190_v38  ;;  %v200_v56 = vpack.c.bf16 %v48_v53, %v46_v52  ;;  %v202_v57 = vpack.c.bf16 %v53_v55, %v51_v54  ;;  %v50_v58 = vld [vmem:[%s482_s1 + $0x120] sm:$0xff]  ;;  %v52_v59 = vld [vmem:[%s482_s1 + $0x130] sm:$0xff]  ;;  %v55_v60 = vld [vmem:[%s482_s1 + $0x148] sm:$0xff]  ;;  %p232_p0 = scmp.ne.s32.totalorder %s159_s30, %s231_s3  ;;  %p237_p2 = scmp.lt.s32.totalorder %s231_s3, %s231_s3 }
  0x1b   :  { %v57_v61 = vld [vmem:[%s482_s1 + $0x158] sm:$0xff]  ;;  %v204_v62 = vpack.c.bf16 %v52_v59, %v50_v58  ;;  %v54_v0 = vld [vmem:[%s482_s1 + $0x140] sm:$0xff]  ;;  %v56_v1 = vld [vmem:[%s482_s1 + $0x150] sm:$0xff] }
  0x1c   :  { %v206_v63 = vpack.c.bf16 %v57_v61, %v55_v60  ;;  %v59_v2 = vld [vmem:[%s482_s1 + $0x168] sm:$0xff]  ;;  %v61_v3 = vld [vmem:[%s482_s1 + $0x178] sm:$0xff]  ;;  %v208_v4 = vpack.c.bf16 %v56_v1, %v54_v0  ;;  %v58_v6 = vld [vmem:[%s482_s1 + $0x160] sm:$0xff]  ;;  %p238_p3 = por %p237_p2, %p236_p1 }
  0x1d   :  { %193 = vmatpush1.bf16.msra.mxu0 %v192_v44  ;;  %v210_v5 = vpack.c.bf16 %v61_v3, %v59_v2  ;;  %v60_v7 = vld [vmem:[%s482_s1 + $0x170] sm:$0xff]  ;;  %v63_v8 = vld [vmem:[%s482_s1 + $0x188] sm:$0xff]  ;;  %v65_v9 = vld [vmem:[%s482_s1 + $0x198] sm:$0xff] }
  0x1e   :  { %195 = vmatprep.subr.bf16.mxu0 %v194_v45  ;;  %v212_v10 = vpack.c.bf16 %v60_v7, %v58_v6  ;;  %v214_v11 = vpack.c.bf16 %v65_v9, %v63_v8  ;;  %v62_v12 = vld [vmem:[%s482_s1 + $0x180] sm:$0xff]  ;;  %v64_v13 = vld [vmem:[%s482_s1 + $0x190] sm:$0xff]  ;;  %v67_v14 = vld [vmem:[%s482_s1 + $0x1a8] sm:$0xff]  ;;  %p239_p4 = pnand %p238_p3, %p232_p0 }
  0x1f   :  { %v69_v15 = vld [vmem:[%s482_s1 + $0x1b8] sm:$0xff]  ;;  %v216_v16 = vpack.c.bf16 %v64_v13, %v62_v12  ;;  %v66_v18 = vld [vmem:[%s482_s1 + $0x1a0] sm:$0xff]  ;;  %v68_v19 = vld [vmem:[%s482_s1 + $0x1b0] sm:$0xff] }
  0x20   :  { %v218_v17 = vpack.c.bf16 %v69_v15, %v67_v14  ;;  %v71_v20 = vld [vmem:[%s482_s1 + $0x1c8] sm:$0xff]  ;;  %v73_v21 = vld [vmem:[%s482_s1 + $0x1d8] sm:$0xff]  ;;  %v220_v22 = vpack.c.bf16 %v68_v19, %v66_v18  ;;  %v70_v24 = vld [vmem:[%s482_s1 + $0x1c0] sm:$0xff] }
  0x21   :  { %197 = vmatpush1.bf16.msra.mxu0 %v196_v50  ;;  %v222_v23 = vpack.c.bf16 %v73_v21, %v71_v20  ;;  %v72_v25 = vld [vmem:[%s482_s1 + $0x1d0] sm:$0xff]  ;;  %v75_v26 = vld [vmem:[%s482_s1 + $0x1e8] sm:$0xff]  ;;  %v77_v27 = vld [vmem:[%s482_s1 + $0x1f8] sm:$0xff] }
  0x22   :  { %199 = vmatprep.subr.bf16.mxu0 %v198_v51  ;;  %v224_v28 = vpack.c.bf16 %v72_v25, %v70_v24  ;;  %v226_v29 = vpack.c.bf16 %v77_v27, %v75_v26  ;;  %v74_v30 = vld [vmem:[%s482_s1 + $0x1e0] sm:$0xff]  ;;  %v76_v31 = vld [vmem:[%s482_s1 + $0x1f0] sm:$0xff] }
  0x23   :  { %v228_v32 = vpack.c.bf16 %v76_v31, %v74_v30  ;;  %v12_v33 = vld [vmem:[%s481_s0] sm:$0xff] }
  0x25   :  { %201 = vmatpush1.bf16.msra.mxu0 %v200_v56 }
  0x26   :  { %203 = vmatprep.subr.bf16.mxu0 %v202_v57 }
  0x29   :  { %205 = vmatpush1.bf16.msra.mxu0 %v204_v62 }
  0x2a   :  { %207 = vmatprep.subr.bf16.mxu0 %v206_v63 }
  0x2d   :  { %209 = vmatpush1.bf16.msra.mxu0 %v208_v4 }
  0x2e   :  { %211 = vmatprep.subr.bf16.mxu0 %v210_v5 }
  0x31   :  { %213 = vmatpush1.bf16.msra.mxu0 %v212_v10 }
  0x32   :  { %215 = vmatprep.subr.bf16.mxu0 %v214_v11 }
  0x35   :  { %217 = vmatpush1.bf16.msra.mxu0 %v216_v16 }
  0x36   :  { %219 = vmatprep.subr.bf16.mxu0 %v218_v17 }
  0x39   :  { %221 = vmatpush1.bf16.msra.mxu0 %v220_v22 }
  0x3a   :  { %223 = vmatprep.subr.bf16.mxu0 %v222_v23 }
  0x3d   :  { %225 = vmatpush1.bf16.msra.mxu0 %v224_v28 }
  0x3e   :  { %227 = vmatprep.subr.bf16.mxu0 %v226_v29 }
  0x41   :  { %229 = vmatpush1.bf16.msra.mxu0 %v228_v32 }
  0x44   :  { %143 = vmatmul.mubr.f32.vlgmr.msra.gmra.mrb[0].mxu0 %v12_v33 }
 0x117   :  { %v144_v34 = vpop.f32.mrb[0].mxu0 }
 0x118   :  { %149 = vst [vmem:[#allocation2] sm:$0xff] %v144_v34  ;;  %v146_v35 = vpop.f32.mrb[1].mxu0 }
 0x119   :  { %151 = vst.msk [vmem:[#allocation2 + $0x8] sm:$0xff] %vm150_vm0, %v146_v35 }
 0x11a   :  { %242 = shalt.err (!%p239_p4)
}
 0x11b   :  { %s243_s0 = scalar_lea.hbm %s483_s2, 256 }
 0x11c   :  { %p244_p5 = scmp.ne.s32.totalorder %s483_s2, %s243_s0  ;;  %p247_p6 = scmp.lt.u32.totalorder %s243_s0, %s483_s2 }
 0x11e   :  { %p249_p7 = pnand %p247_p6, %p244_p5 }
 0x120   :  { %252 = shalt.err (!%p249_p7)
}
 0x121   :  { %161 = dma.vmem_to_hbm [thread:$0]  %s159_s30, 256, %s483_s2, [#allocation3]  }
 0x122   :  { %253 = dma.done.wait [#allocation3], 256  }
 0x123   :  { %254 = vsyncadd [#allocation3], 4294967040 }
 0x124   :  { %165 = vsyncpa [#allocation3], 1 }

</bundles_post_ra>
